<compile_context>
chip_gen: v5e
topology: v5e:2x2
jax: 0.10.0
libtpu: 0.0.40
codegen_flags: <defaults>
</compile_context>

<pallas_src>
import functools

import numpy as np

import jax
import jax.numpy as jnp
from jax.experimental import pallas as pl
from jax.experimental.pallas import tpu as pltpu


# ---------------------------------------------------------------------------
# Static (per-shape) construction of the bilinear / Kronecker matrices.
# Pure NumPy + lru_cache: paid once per shape, never per trace/call.
# ---------------------------------------------------------------------------
def _bilinear_matrix_np(in_size: int, out_size: int) -> np.ndarray:
    """Row-stochastic (out_size, in_size) matrix implementing 1-D bilinear
    interpolation with align_corners=True (PyTorch semantics)."""
    if out_size == 1:
        src = np.zeros((1,), dtype=np.float64)
    else:
        src = np.arange(out_size, dtype=np.float64) * ((in_size - 1) / (out_size - 1))
    i0 = np.clip(np.floor(src).astype(np.int64), 0, in_size - 1)
    i1 = np.clip(i0 + 1, 0, in_size - 1)
    w1 = src - i0.astype(np.float64)
    w0 = 1.0 - w1
    m = np.zeros((out_size, in_size), dtype=np.float64)
    m[np.arange(out_size), i0] += w0
    m[np.arange(out_size), i1] += w1
    return m


@functools.lru_cache(maxsize=None)
def _kron_interp_matrix_np(H: int, W: int, H_out: int, W_out: int,
                           n_pad: int) -> np.ndarray:
    """(H*W, n_pad) contraction-major Kronecker bilinear matrix:
    M[h*W+w, oh*W_out+ow] = Wh[oh,h] * Ww[ow,w]; columns >= H_out*W_out are
    zero padding (lane-density padding, sliced off in the wrapper)."""
    wh = _bilinear_matrix_np(H, H_out)            # (H_out, H)
    ww = _bilinear_matrix_np(W, W_out)            # (W_out, W)
    m = np.einsum("oh,pw->hwop", wh, ww).reshape(H * W, H_out * W_out)
    if n_pad > H_out * W_out:
        m = np.pad(m, ((0, 0), (0, n_pad - H_out * W_out)))
    return np.ascontiguousarray(m, dtype=np.float32)


# ---------------------------------------------------------------------------
# Kernel
# ---------------------------------------------------------------------------
def subdecoder_kernel(x_ref, wc_ref, m_ref, b_ref, o_ref, y0_ref):
    # x_ref : (B, C, HW)        whole batch, spatially flattened (f32)
    # wc_ref: (K, C)            1x1 conv weight (f32)
    # m_ref : (HW, HWo_pad)     Kronecker bilinear matrix (bf16 by default)
    # b_ref : (B*K, 1)          per-output-row bias (f32)
    # o_ref : (B*K, HWo_pad)    lane-dense output slab (f32)
    # y0_ref: (B*K, HW)         f32 VMEM scratch (channel-mixed activations)
    B, C, _ = x_ref.shape
    K = wc_ref.shape[0]

    x = x_ref[...]      # (B, C, HW)
    w = wc_ref[...]     # (K, C)

    # 1x1 conv (channel mix) FIRST, on the VPU: C broadcast FMAs per image.
    # (An MXU dot at K=2, C=4 would be <2% utilized and only add a dependent
    # weight-push + result-FIFO latency ahead of the big matmul.)
    for b in range(B):                       # static unroll (B, C, K tiny)
        acc = w[:, 0:1] * x[b, 0:1, :]       # (K,1)*(1,HW) -> (K,HW)
        for c in range(1, C):
            acc = acc + w[:, c:c + 1] * x[b, c:c + 1, :]
        y0_ref[b * K:(b + 1) * K, :] = acc   # fold batch into matmul M dim

    # Bilinear upsample of ALL B*K rows as one lane-dense MXU matmul:
    # contraction dim = HW, single RHS fetch / weight push for the whole
    # batch, f32 accumulation.
    up = jnp.dot(y0_ref[...].astype(m_ref.dtype), m_ref[...],
                 preferred_element_type=jnp.float32)        # (B*K, HWo_pad)

    # Bias add + cast epilogue in f32 (v5e VPU has no bf16; output exact f32).
    o_ref[...] = (up + b_ref[...]).astype(o_ref.dtype)


# ---------------------------------------------------------------------------
# Wrapper
# ---------------------------------------------------------------------------
def sub_decoder(x, conv_w, conv_b, scale_factor, interp_dtype=jnp.bfloat16):
    """x: (B, C, H, W); conv_w: (K, C, 1, 1); conv_b: (K,).

    interp_dtype controls the storage dtype of the Kronecker interpolation
    matrix (bf16 default: halves the dominant DMA / VMEM residency; MXU
    accumulation is f32 either way). Pass jnp.float32 for bit-tight output.
    """
    B, C, H, W = x.shape
    K = conv_w.shape[0]
    # int() truncation matches PyTorch nn.Upsample floor semantics for
    # non-integer scale factors — intentional. (If scale factors may arrive as
    # e.g. 1.9999999 from config parsing, add a round-with-epsilon guard.)
    H_out = int(H * scale_factor)
    W_out = int(W * scale_factor)
    HW, HWo = H * W, H_out * W_out
    HWo_pad = ((HWo + 127) // 128) * 128      # lane-dense output -> unmasked vst
    BK = B * K

    x_flat = x.reshape(B, C, HW).astype(jnp.float32)
    wc = conv_w.reshape(K, C).astype(jnp.float32)
    m = jnp.asarray(_kron_interp_matrix_np(H, W, H_out, W_out, HWo_pad),
                    dtype=interp_dtype)
    bias = jnp.tile(conv_b.reshape(1, K).astype(jnp.float32), (B, 1)).reshape(BK, 1)

    out = pl.pallas_call(
        subdecoder_kernel,
        out_shape=jax.ShapeDtypeStruct((BK, HWo_pad), jnp.float32),
        in_specs=[
            pl.BlockSpec(memory_space=pltpu.MemorySpace.VMEM),   # x   (8 KiB)
            pl.BlockSpec(memory_space=pltpu.MemorySpace.VMEM),   # wc
            pl.BlockSpec(memory_space=pltpu.MemorySpace.VMEM),   # m   (0.5 MiB bf16)
            pl.BlockSpec(memory_space=pltpu.MemorySpace.VMEM),   # bias
        ],
        out_specs=pl.BlockSpec(memory_space=pltpu.MemorySpace.VMEM),
        scratch_shapes=[pltpu.VMEM((BK, HW), jnp.float32)],
    )(x_flat, wc, m, bias)

    # Free wrapper-side layout plumbing: drop lane padding, back to NCHW.
    return out[:, :HWo].reshape(B, K, H_out, W_out)


def sub_decoder_reference(x, conv_w, conv_b, scale_factor):
    """Pure-JAX f32 reference: upsample (align_corners=True) then 1x1 conv+bias,
    in the original (module) op order."""
    B, C, H, W = x.shape
    K = conv_w.shape[0]
    H_out, W_out = int(H * scale_factor), int(W * scale_factor)
    wh = jnp.asarray(_bilinear_matrix_np(H, H_out), jnp.float32)
    ww = jnp.asarray(_bilinear_matrix_np(W, W_out), jnp.float32)
    up = jnp.einsum("oh,bchw->bcow", wh, x)
    up = jnp.einsum("bcow,pw->bcop", up, ww)
    y = jnp.einsum("kc,bcop->bkop", conv_w.reshape(K, C), up)
    return y + conv_b.reshape(1, K, 1, 1)


if __name__ == "__main__":
    # Small config consistent with the module: in_channels=4, num_classes=2, scale=2
    B, C, H, W = 2, 4, 16, 16
    num_classes = 2
    scale_factor = 2

    key = jax.random.PRNGKey(0)
    kx, kw, kb = jax.random.split(key, 3)
    x = jax.random.normal(kx, (B, C, H, W), dtype=jnp.float32)
    conv_w = jax.random.normal(kw, (num_classes, C, 1, 1), dtype=jnp.float32) * 0.1
    conv_b = jax.random.normal(kb, (num_classes,), dtype=jnp.float32) * 0.1

    ref = sub_decoder_reference(x, conv_w, conv_b, scale_factor)

    # Exact path (f32 interpolation matrix): tight check against f32 reference.
    out_f32 = jax.block_until_ready(
        sub_decoder(x, conv_w, conv_b, scale_factor, interp_dtype=jnp.float32))
    assert out_f32.shape == (B, num_classes, H * scale_factor, W * scale_factor)
    assert jnp.allclose(out_f32, ref, atol=1e-4, rtol=1e-4)

    # Default (production) path: bf16 interpolation matrix / matmul operands,
    # f32 accumulation -> ~1e-3-level deviation from the pure-f32 reference.
    out = jax.block_until_ready(sub_decoder(x, conv_w, conv_b, scale_factor))
    assert out.shape == (B, num_classes, H * scale_factor, W * scale_factor)
    assert jnp.allclose(out, ref, atol=2e-2, rtol=2e-2)

    print("KERNEL_OK")
</pallas_src>

<mosaic_0001>
module attributes {stable_mosaic.version = 11 : i64} {
  func.func @subdecoder_kernel(%arg0: memref<2x4x256xf32, #tpu.memory_space<vmem>>, %arg1: memref<2x4xf32, #tpu.memory_space<vmem>>, %arg2: memref<256x1024xf32, #tpu.memory_space<vmem>>, %arg3: memref<4x1xf32, #tpu.memory_space<vmem>>, %arg4: memref<4x1024xf32, #tpu.memory_space<vmem>>, %arg5: memref<4x256xf32, #tpu.memory_space<vmem>>) attributes {dimension_semantics = [], scalar_prefetch = 0 : i64, scratch_operands = 1 : i64, tpu.core_type = #tpu.core_type<tc>} {
    %c0 = arith.constant 0 : index
    %c0_0 = arith.constant 0 : index
    %c0_1 = arith.constant 0 : index
    %0 = vector.load %arg0[%c0, %c0_0, %c0_1] : memref<2x4x256xf32, #tpu.memory_space<vmem>>, vector<2x4x256xf32>
    %c0_2 = arith.constant 0 : index
    %c0_3 = arith.constant 0 : index
    %1 = vector.load %arg1[%c0_2, %c0_3] : memref<2x4xf32, #tpu.memory_space<vmem>>, vector<2x4xf32>
    %2 = vector.extract_strided_slice %1 {offsets = [0, 0], sizes = [2, 1], strides = [1, 1]} : vector<2x4xf32> to vector<2x1xf32>
    %3 = vector.extract_strided_slice %0 {offsets = [0, 0, 0], sizes = [1, 1, 256], strides = [1, 1, 1]} : vector<2x4x256xf32> to vector<1x1x256xf32>
    %4 = vector.shape_cast %3 : vector<1x1x256xf32> to vector<1x256xf32>
    %5 = vector.broadcast %2 : vector<2x1xf32> to vector<2x256xf32>
    %6 = vector.broadcast %4 : vector<1x256xf32> to vector<2x256xf32>
    %7 = arith.mulf %5, %6 : vector<2x256xf32>
    %8 = vector.extract_strided_slice %1 {offsets = [0, 1], sizes = [2, 1], strides = [1, 1]} : vector<2x4xf32> to vector<2x1xf32>
    %9 = vector.extract_strided_slice %0 {offsets = [0, 1, 0], sizes = [1, 1, 256], strides = [1, 1, 1]} : vector<2x4x256xf32> to vector<1x1x256xf32>
    %10 = vector.shape_cast %9 : vector<1x1x256xf32> to vector<1x256xf32>
    %11 = vector.broadcast %8 : vector<2x1xf32> to vector<2x256xf32>
    %12 = vector.broadcast %10 : vector<1x256xf32> to vector<2x256xf32>
    %13 = arith.mulf %11, %12 : vector<2x256xf32>
    %14 = arith.addf %7, %13 : vector<2x256xf32>
    %15 = vector.extract_strided_slice %1 {offsets = [0, 2], sizes = [2, 1], strides = [1, 1]} : vector<2x4xf32> to vector<2x1xf32>
    %16 = vector.extract_strided_slice %0 {offsets = [0, 2, 0], sizes = [1, 1, 256], strides = [1, 1, 1]} : vector<2x4x256xf32> to vector<1x1x256xf32>
    %17 = vector.shape_cast %16 : vector<1x1x256xf32> to vector<1x256xf32>
    %18 = vector.broadcast %15 : vector<2x1xf32> to vector<2x256xf32>
    %19 = vector.broadcast %17 : vector<1x256xf32> to vector<2x256xf32>
    %20 = arith.mulf %18, %19 : vector<2x256xf32>
    %21 = arith.addf %14, %20 : vector<2x256xf32>
    %22 = vector.extract_strided_slice %1 {offsets = [0, 3], sizes = [2, 1], strides = [1, 1]} : vector<2x4xf32> to vector<2x1xf32>
    %23 = vector.extract_strided_slice %0 {offsets = [0, 3, 0], sizes = [1, 1, 256], strides = [1, 1, 1]} : vector<2x4x256xf32> to vector<1x1x256xf32>
    %24 = vector.shape_cast %23 : vector<1x1x256xf32> to vector<1x256xf32>
    %25 = vector.broadcast %22 : vector<2x1xf32> to vector<2x256xf32>
    %26 = vector.broadcast %24 : vector<1x256xf32> to vector<2x256xf32>
    %27 = arith.mulf %25, %26 : vector<2x256xf32>
    %28 = arith.addf %21, %27 : vector<2x256xf32>
    %c0_4 = arith.constant 0 : index
    %c0_5 = arith.constant 0 : index
    %29 = vector.load %arg5[%c0_4, %c0_5] : memref<4x256xf32, #tpu.memory_space<vmem>>, vector<2x256xf32>
    tpu.vector_store %arg5[%c0_4, %c0_5], %28 {strides = array<i32>} : memref<4x256xf32, #tpu.memory_space<vmem>>, vector<2x256xf32>,
    %30 = vector.extract_strided_slice %1 {offsets = [0, 0], sizes = [2, 1], strides = [1, 1]} : vector<2x4xf32> to vector<2x1xf32>
    %31 = vector.extract_strided_slice %0 {offsets = [1, 0, 0], sizes = [1, 1, 256], strides = [1, 1, 1]} : vector<2x4x256xf32> to vector<1x1x256xf32>
    %32 = vector.shape_cast %31 : vector<1x1x256xf32> to vector<1x256xf32>
    %33 = vector.broadcast %30 : vector<2x1xf32> to vector<2x256xf32>
    %34 = vector.broadcast %32 : vector<1x256xf32> to vector<2x256xf32>
    %35 = arith.mulf %33, %34 : vector<2x256xf32>
    %36 = vector.extract_strided_slice %1 {offsets = [0, 1], sizes = [2, 1], strides = [1, 1]} : vector<2x4xf32> to vector<2x1xf32>
    %37 = vector.extract_strided_slice %0 {offsets = [1, 1, 0], sizes = [1, 1, 256], strides = [1, 1, 1]} : vector<2x4x256xf32> to vector<1x1x256xf32>
    %38 = vector.shape_cast %37 : vector<1x1x256xf32> to vector<1x256xf32>
    %39 = vector.broadcast %36 : vector<2x1xf32> to vector<2x256xf32>
    %40 = vector.broadcast %38 : vector<1x256xf32> to vector<2x256xf32>
    %41 = arith.mulf %39, %40 : vector<2x256xf32>
    %42 = arith.addf %35, %41 : vector<2x256xf32>
    %43 = vector.extract_strided_slice %1 {offsets = [0, 2], sizes = [2, 1], strides = [1, 1]} : vector<2x4xf32> to vector<2x1xf32>
    %44 = vector.extract_strided_slice %0 {offsets = [1, 2, 0], sizes = [1, 1, 256], strides = [1, 1, 1]} : vector<2x4x256xf32> to vector<1x1x256xf32>
    %45 = vector.shape_cast %44 : vector<1x1x256xf32> to vector<1x256xf32>
    %46 = vector.broadcast %43 : vector<2x1xf32> to vector<2x256xf32>
    %47 = vector.broadcast %45 : vector<1x256xf32> to vector<2x256xf32>
    %48 = arith.mulf %46, %47 : vector<2x256xf32>
    %49 = arith.addf %42, %48 : vector<2x256xf32>
    %50 = vector.extract_strided_slice %1 {offsets = [0, 3], sizes = [2, 1], strides = [1, 1]} : vector<2x4xf32> to vector<2x1xf32>
    %51 = vector.extract_strided_slice %0 {offsets = [1, 3, 0], sizes = [1, 1, 256], strides = [1, 1, 1]} : vector<2x4x256xf32> to vector<1x1x256xf32>
    %52 = vector.shape_cast %51 : vector<1x1x256xf32> to vector<1x256xf32>
    %53 = vector.broadcast %50 : vector<2x1xf32> to vector<2x256xf32>
    %54 = vector.broadcast %52 : vector<1x256xf32> to vector<2x256xf32>
    %55 = arith.mulf %53, %54 : vector<2x256xf32>
    %56 = arith.addf %49, %55 : vector<2x256xf32>
    %c2 = arith.constant 2 : index
    %c0_6 = arith.constant 0 : index
    %57 = vector.load %arg5[%c2, %c0_6] : memref<4x256xf32, #tpu.memory_space<vmem>>, vector<2x256xf32>
    tpu.vector_store %arg5[%c2, %c0_6], %56 {strides = array<i32>} : memref<4x256xf32, #tpu.memory_space<vmem>>, vector<2x256xf32>,
    %c0_7 = arith.constant 0 : index
    %c0_8 = arith.constant 0 : index
    %58 = vector.load %arg5[%c0_7, %c0_8] : memref<4x256xf32, #tpu.memory_space<vmem>>, vector<4x256xf32>
    %c0_9 = arith.constant 0 : index
    %c0_10 = arith.constant 0 : index
    %59 = vector.load %arg2[%c0_9, %c0_10] : memref<256x1024xf32, #tpu.memory_space<vmem>>, vector<256x1024xf32>
    %cst = arith.constant dense<0.000000e+00> : vector<4x1024xf32>
    %60 = tpu.matmul %58, %59, %cst {dimension_numbers = #tpu.dot_dimension_numbers<[1], [0], [0], [1], [0, 0, 1, 1], [], []>} : vector<4x256xf32>, vector<256x1024xf32>, vector<4x1024xf32> -> vector<4x1024xf32>
    %c0_11 = arith.constant 0 : index
    %c0_12 = arith.constant 0 : index
    %61 = vector.load %arg3[%c0_11, %c0_12] : memref<4x1xf32, #tpu.memory_space<vmem>>, vector<4x1xf32>
    %62 = vector.broadcast %61 : vector<4x1xf32> to vector<4x1024xf32>
    %63 = arith.addf %60, %62 : vector<4x1024xf32>
    %c0_13 = arith.constant 0 : index
    %c0_14 = arith.constant 0 : index
    %64 = vector.load %arg4[%c0_13, %c0_14] : memref<4x1024xf32, #tpu.memory_space<vmem>>, vector<4x1024xf32>
    tpu.vector_store %arg4[%c0_13, %c0_14], %63 {strides = array<i32>} : memref<4x1024xf32, #tpu.memory_space<vmem>>, vector<4x1024xf32>,
    return
  }
}

</mosaic_0001>

<bundles_post_ra>
// kernel: tpu_custom_call.1
= control target key start
LH: loop header
LB: loop body
LE: loop exit
PB: predicated region body
PF: predicated region fallthrough
CT: control target
= control target key end

     0   :  { %9 = vsyncpa [#allocation4], 0  ;;  %s1000_s0 = inlined_call_operand.hbm [shape: f32[2,4,256], index: 0, kind: input, shape index: {}]   ;;  %s1001_s1 = inlined_call_operand.vmem [shape: f32[2,4], index: 1, kind: input, shape index: {}]   ;;  %s1002_s2 = inlined_call_operand.hbm [shape: f32[256,1024], index: 2, kind: input, shape index: {}]   ;;  %s1003_s3 = inlined_call_operand.vmem [shape: f32[4,1], index: 3, kind: input, shape index: {}]   ;;  %s1004_s4 = inlined_call_operand.hbm [shape: f32[4,1024], index: 4, kind: output, shape index: {}]  }
   0x1   :  { %10 = vsyncpa [#allocation7], 0 }
   0x2   :  { %11 = vsyncpa [#allocation5], 0  ;;  %s16_s17 = sshll.u32 %s1000_s0, 4  ;;  %s888_s18 = smov [#allocation3]   ;;  %s17_s17 = int_to_ptr.hbm [resolvable:$true] %s16_s17 }
   0x3   :  { %s18_s19 = sshll.u32 %s888_s18, 4  ;;  %s31_s22 = sshll.u32 %s1002_s2, 4  ;;  %s19_s19 = int_to_ptr.vmem [resolvable:$true] %s18_s19  ;;  %s32_s22 = int_to_ptr.hbm [resolvable:$true] %s31_s22 }
   0x4   :  { %s889_s23 = smov 128   ;;  %s890_s24 = smov 8  }
   0x5   :  { %24 = dma.hbm_to_vmem [thread:$0]  %s17_s17, 256, %s19_s19, [#allocation4], %s889_s23, %s889_s23, %s890_s24  }
   0x6   :  { %s891_s25 = smov [#allocation6]   ;;  %s892_s27 = smov 1024  }
   0x7   :  { %s33_s26 = sshll.u32 %s891_s25, 4  ;;  %s893_s28 = smov 64   ;;  %s34_s26 = int_to_ptr.vmem [resolvable:$true] %s33_s26 }
   0x8   :  { %39 = dma.hbm_to_vmem [thread:$0]  %s32_s22, 32768, %s34_s26, [#allocation7], %s892_s27, %s892_s27, %s893_s28  }
   0x9   :  { %882 = dma.done.wait [#allocation4], 256  }
   0xa   :  { %883 = vsyncadd [#allocation4], 4294967040 }
   0xb   :  { %884 = dma.done.wait [#allocation7], 32768  }
   0xc   :  { %885 = vsyncadd [#allocation7], 4294934528  ;;  %v894_v0 = vmov 0   ;;  %v895_v1 = vmov 2   ;;  %v52_v2 = vld [vmem:[%s1001_s1] sm:$0x3] }
   0xd   :  { %804 = vset.pattern.permute.xlu0 %v894_v0  ;;  %806 = vset.pattern.permute.xlu1 %v895_v1  ;;  %v283_v3 = vld [vmem:[#allocation6 + $0x3c0] sm:$0xff]  ;;  %v284_v5 = vld [vmem:[#allocation6 + $0x3c8] sm:$0xff]  ;;  %v896_v19 = vmov 1   ;;  %v897_v20 = vmov 3   ;;  %vm112_vm0 = vcmask 1043456   ;;  %s782_s7 = sshll.u32 %s1004_s4, 4  ;;  %s783_s7 = int_to_ptr.hbm [resolvable:$true] %s782_s7 }
   0xe   :  { %808 = vset.pattern.permute.xlu2 %v894_v0  ;;  %v411_v4 = vld [vmem:[#allocation6 + $0x7c0] sm:$0xff]  ;;  %55 = vperm.xlu0 %804, %v52_v2   ;;  %v412_v6 = vld [vmem:[#allocation6 + $0x7c8] sm:$0xff] }
   0xf   :  { %82 = vperm.xlu1 %806, %v52_v2   ;;  %v275_v7 = vld [vmem:[#allocation6 + $0x380] sm:$0xff]  ;;  %431 = vmatpush.msra.mxu0 %v283_v3  ;;  %v276_v9 = vld [vmem:[#allocation6 + $0x388] sm:$0xff] }
  0x10   :  { %451 = vmatpush.msra.mxu1 %v411_v4  ;;  %v403_v8 = vld [vmem:[#allocation6 + $0x780] sm:$0xff]  ;;  %v404_v10 = vld [vmem:[#allocation6 + $0x788] sm:$0xff]  ;;  %471 = vmatpush.msra.mxu2 %v284_v5  ;;  %v285_v5 = vld [vmem:[#allocation6 + $0x3d0] sm:$0xff] }
  0x11   :  { %491 = vmatpush.msra.mxu3 %v412_v6  ;;  %v267_v11 = vld [vmem:[#allocation6 + $0x340] sm:$0xff]  ;;  %432 = vmatpush.msra.mxu0 %v275_v7  ;;  %v268_v13 = vld [vmem:[#allocation6 + $0x348] sm:$0xff]  ;;  %v413_v6 = vld [vmem:[#allocation6 + $0x7d0] sm:$0xff] }
  0x12   :  { %v395_v12 = vld [vmem:[#allocation6 + $0x740] sm:$0xff]  ;;  %452 = vmatpush.msra.mxu1 %v403_v8  ;;  %v396_v14 = vld [vmem:[#allocation6 + $0x748] sm:$0xff]  ;;  %472 = vmatpush.msra.mxu2 %v276_v9  ;;  %v286_v7 = vld [vmem:[#allocation6 + $0x3d8] sm:$0xff] }
  0x13   :  { %492 = vmatpush.msra.mxu3 %v404_v10  ;;  %v259_v15 = vld [vmem:[#allocation6 + $0x300] sm:$0xff]  ;;  %433 = vmatpush.msra.mxu0 %v267_v11  ;;  %v260_v17 = vld [vmem:[#allocation6 + $0x308] sm:$0xff]  ;;  %v414_v8 = vld [vmem:[#allocation6 + $0x7d8] sm:$0xff] }
  0x14   :  { %v387_v16 = vld [vmem:[#allocation6 + $0x700] sm:$0xff]  ;;  %453 = vmatpush.msra.mxu1 %v395_v12  ;;  %473 = vmatpush.msra.mxu2 %v268_v13  ;;  %v388_v18 = vld [vmem:[#allocation6 + $0x708] sm:$0xff]  ;;  %v277_v9 = vld [vmem:[#allocation6 + $0x390] sm:$0xff] }
  0x15   :  { %493 = vmatpush.msra.mxu3 %v396_v14  ;;  %434 = vmatpush.msra.mxu0 %v259_v15  ;;  %v251_v21 = vld [vmem:[#allocation6 + $0x2c0] sm:$0xff]  ;;  %v252_v23 = vld [vmem:[#allocation6 + $0x2c8] sm:$0xff]  ;;  %v405_v10 = vld [vmem:[#allocation6 + $0x790] sm:$0xff] }
  0x16   :  { %454 = vmatpush.msra.mxu1 %v387_v16  ;;  %805 = vset.pattern.permute.xlu0 %v896_v19  ;;  %v379_v22 = vld [vmem:[#allocation6 + $0x6c0] sm:$0xff]  ;;  %v380_v24 = vld [vmem:[#allocation6 + $0x6c8] sm:$0xff]  ;;  %v278_v11 = vld [vmem:[#allocation6 + $0x398] sm:$0xff] }
  0x17   :  { %807 = vset.pattern.permute.xlu1 %v897_v20  ;;  %68 = vperm.xlu0 %805, %v52_v2   ;;  %v243_v25 = vld [vmem:[#allocation6 + $0x280] sm:$0xff]  ;;  %v244_v27 = vld [vmem:[#allocation6 + $0x288] sm:$0xff]  ;;  %v406_v12 = vld [vmem:[#allocation6 + $0x798] sm:$0xff] }
  0x18   :  { %96 = vperm.xlu1 %807, %v52_v2   ;;  %474 = vmatpush.msra.mxu2 %v260_v17  ;;  %v371_v26 = vld [vmem:[#allocation6 + $0x680] sm:$0xff]  ;;  %v372_v28 = vld [vmem:[#allocation6 + $0x688] sm:$0xff]  ;;  %v269_v13 = vld [vmem:[#allocation6 + $0x350] sm:$0xff] }
  0x19   :  { %494 = vmatpush.msra.mxu3 %v388_v18  ;;  %435 = vmatpush.msra.mxu0 %v251_v21  ;;  %v235_v29 = vld [vmem:[#allocation6 + $0x240] sm:$0xff]  ;;  %v236_v31 = vld [vmem:[#allocation6 + $0x248] sm:$0xff]  ;;  %v397_v14 = vld [vmem:[#allocation6 + $0x750] sm:$0xff] }
  0x1a   :  { %455 = vmatpush.msra.mxu1 %v379_v22  ;;  %475 = vmatpush.msra.mxu2 %v252_v23  ;;  %v363_v30 = vld [vmem:[#allocation6 + $0x640] sm:$0xff]  ;;  %v364_v32 = vld [vmem:[#allocation6 + $0x648] sm:$0xff]  ;;  %v270_v15 = vld [vmem:[#allocation6 + $0x358] sm:$0xff] }
  0x1b   :  { %495 = vmatpush.msra.mxu3 %v380_v24  ;;  %436 = vmatpush.msra.mxu0 %v243_v25  ;;  %v227_v33 = vld [vmem:[#allocation6 + $0x200] sm:$0xff]  ;;  %v228_v35 = vld [vmem:[#allocation6 + $0x208] sm:$0xff]  ;;  %v398_v16 = vld [vmem:[#allocation6 + $0x758] sm:$0xff] }
  0x1c   :  { %456 = vmatpush.msra.mxu1 %v371_v26  ;;  %476 = vmatpush.msra.mxu2 %v244_v27  ;;  %v355_v34 = vld [vmem:[#allocation6 + $0x600] sm:$0xff]  ;;  %v356_v36 = vld [vmem:[#allocation6 + $0x608] sm:$0xff]  ;;  %v261_v17 = vld [vmem:[#allocation6 + $0x310] sm:$0xff] }
  0x1d   :  { %496 = vmatpush.msra.mxu3 %v372_v28  ;;  %437 = vmatpush.msra.mxu0 %v235_v29  ;;  %v219_v37 = vld [vmem:[#allocation6 + $0x1c0] sm:$0xff]  ;;  %v220_v39 = vld [vmem:[#allocation6 + $0x1c8] sm:$0xff]  ;;  %v389_v18 = vld [vmem:[#allocation6 + $0x710] sm:$0xff] }
  0x1e   :  { %457 = vmatpush.msra.mxu1 %v363_v30  ;;  %477 = vmatpush.msra.mxu2 %v236_v31  ;;  %v347_v38 = vld [vmem:[#allocation6 + $0x5c0] sm:$0xff]  ;;  %v348_v40 = vld [vmem:[#allocation6 + $0x5c8] sm:$0xff]  ;;  %v262_v19 = vld [vmem:[#allocation6 + $0x318] sm:$0xff] }
  0x1f   :  { %497 = vmatpush.msra.mxu3 %v364_v32  ;;  %438 = vmatpush.msra.mxu0 %v227_v33  ;;  %v211_v41 = vld [vmem:[#allocation6 + $0x180] sm:$0xff]  ;;  %v212_v43 = vld [vmem:[#allocation6 + $0x188] sm:$0xff]  ;;  %v390_v20 = vld [vmem:[#allocation6 + $0x718] sm:$0xff] }
  0x20   :  { %458 = vmatpush.msra.mxu1 %v355_v34  ;;  %478 = vmatpush.msra.mxu2 %v228_v35  ;;  %v339_v42 = vld [vmem:[#allocation6 + $0x580] sm:$0xff]  ;;  %v340_v44 = vld [vmem:[#allocation6 + $0x588] sm:$0xff]  ;;  %v253_v21 = vld [vmem:[#allocation6 + $0x2d0] sm:$0xff] }
  0x21   :  { %498 = vmatpush.msra.mxu3 %v356_v36  ;;  %439 = vmatpush.msra.mxu0 %v219_v37  ;;  %v203_v45 = vld [vmem:[#allocation6 + $0x140] sm:$0xff]  ;;  %v204_v47 = vld [vmem:[#allocation6 + $0x148] sm:$0xff]  ;;  %v381_v22 = vld [vmem:[#allocation6 + $0x6d0] sm:$0xff] }
  0x22   :  { %459 = vmatpush.msra.mxu1 %v347_v38  ;;  %479 = vmatpush.msra.mxu2 %v220_v39  ;;  %v331_v46 = vld [vmem:[#allocation6 + $0x540] sm:$0xff]  ;;  %v332_v48 = vld [vmem:[#allocation6 + $0x548] sm:$0xff]  ;;  %v254_v23 = vld [vmem:[#allocation6 + $0x2d8] sm:$0xff] }
  0x23   :  { %499 = vmatpush.msra.mxu3 %v348_v40  ;;  %440 = vmatpush.msra.mxu0 %v211_v41  ;;  %v195_v49 = vld [vmem:[#allocation6 + $0x100] sm:$0xff]  ;;  %v196_v51 = vld [vmem:[#allocation6 + $0x108] sm:$0xff]  ;;  %v382_v24 = vld [vmem:[#allocation6 + $0x6d8] sm:$0xff] }
  0x24   :  { %460 = vmatpush.msra.mxu1 %v339_v42  ;;  %480 = vmatpush.msra.mxu2 %v212_v43  ;;  %v323_v50 = vld [vmem:[#allocation6 + $0x500] sm:$0xff]  ;;  %v324_v52 = vld [vmem:[#allocation6 + $0x508] sm:$0xff]  ;;  %v245_v25 = vld [vmem:[#allocation6 + $0x290] sm:$0xff] }
  0x25   :  { %500 = vmatpush.msra.mxu3 %v340_v44  ;;  %441 = vmatpush.msra.mxu0 %v203_v45  ;;  %v187_v53 = vld [vmem:[#allocation6 + $0xc0] sm:$0xff]  ;;  %v188_v55 = vld [vmem:[#allocation6 + $0xc8] sm:$0xff]  ;;  %v373_v26 = vld [vmem:[#allocation6 + $0x690] sm:$0xff] }
  0x26   :  { %461 = vmatpush.msra.mxu1 %v331_v46  ;;  %481 = vmatpush.msra.mxu2 %v204_v47  ;;  %v315_v54 = vld [vmem:[#allocation6 + $0x4c0] sm:$0xff]  ;;  %v316_v56 = vld [vmem:[#allocation6 + $0x4c8] sm:$0xff]  ;;  %v246_v27 = vld [vmem:[#allocation6 + $0x298] sm:$0xff] }
  0x27   :  { %501 = vmatpush.msra.mxu3 %v332_v48  ;;  %442 = vmatpush.msra.mxu0 %v195_v49  ;;  %v179_v57 = vld [vmem:[#allocation6 + $0x80] sm:$0xff]  ;;  %v180_v59 = vld [vmem:[#allocation6 + $0x88] sm:$0xff]  ;;  %v374_v28 = vld [vmem:[#allocation6 + $0x698] sm:$0xff] }
  0x28   :  { %462 = vmatpush.msra.mxu1 %v323_v50  ;;  %482 = vmatpush.msra.mxu2 %v196_v51  ;;  %v307_v58 = vld [vmem:[#allocation6 + $0x480] sm:$0xff]  ;;  %v308_v60 = vld [vmem:[#allocation6 + $0x488] sm:$0xff]  ;;  %v237_v29 = vld [vmem:[#allocation6 + $0x250] sm:$0xff] }
  0x29   :  { %502 = vmatpush.msra.mxu3 %v324_v52  ;;  %809 = vset.pattern.permute.xlu0 %v894_v0  ;;  %v171_v61 = vld [vmem:[#allocation6 + $0x40] sm:$0xff]  ;;  %v172_v63 = vld [vmem:[#allocation6 + $0x48] sm:$0xff]  ;;  %v365_v30 = vld [vmem:[#allocation6 + $0x650] sm:$0xff] }
  0x2a   :  { %443 = vmatpush.msra.mxu0 %v187_v53  ;;  %463 = vmatpush.msra.mxu1 %v315_v54  ;;  %v299_v62 = vld [vmem:[#allocation6 + $0x440] sm:$0xff]  ;;  %v300_v1 = vld [vmem:[#allocation6 + $0x448] sm:$0xff]  ;;  %v238_v31 = vld [vmem:[#allocation6 + $0x258] sm:$0xff] }
  0x2b   :  { %483 = vmatpush.msra.mxu2 %v188_v55  ;;  %503 = vmatpush.msra.mxu3 %v316_v56  ;;  %v163_v0 = vld [vmem:[#allocation6] sm:$0xff]  ;;  %v164_v3 = vld [vmem:[#allocation6 + $0x8] sm:$0xff]  ;;  %v366_v32 = vld [vmem:[#allocation6 + $0x658] sm:$0xff] }
  0x2c   :  { %444 = vmatpush.msra.mxu0 %v179_v57  ;;  %464 = vmatpush.msra.mxu1 %v307_v58  ;;  %v291_v2 = vld [vmem:[#allocation6 + $0x400] sm:$0xff]  ;;  %v292_v4 = vld [vmem:[#allocation6 + $0x408] sm:$0xff]  ;;  %v229_v33 = vld [vmem:[#allocation6 + $0x210] sm:$0xff] }
  0x2d   :  { %484 = vmatpush.msra.mxu2 %v180_v59  ;;  %504 = vmatpush.msra.mxu3 %v308_v60  ;;  %v357_v34 = vld [vmem:[#allocation6 + $0x610] sm:$0xff]  ;;  %v230_v35 = vld [vmem:[#allocation6 + $0x218] sm:$0xff] }
  0x2e   :  { %445 = vmatpush.msra.mxu0 %v171_v61  ;;  %465 = vmatpush.msra.mxu1 %v299_v62  ;;  %v358_v36 = vld [vmem:[#allocation6 + $0x618] sm:$0xff]  ;;  %v221_v37 = vld [vmem:[#allocation6 + $0x1d0] sm:$0xff] }
  0x2f   :  { %485 = vmatpush.msra.mxu2 %v172_v63  ;;  %505 = vmatpush.msra.mxu3 %v300_v1  ;;  %v349_v38 = vld [vmem:[#allocation6 + $0x5d0] sm:$0xff]  ;;  %v222_v39 = vld [vmem:[#allocation6 + $0x1d8] sm:$0xff] }
  0x30   :  { %446 = vmatpush.msra.mxu0 %v163_v0  ;;  %466 = vmatpush.msra.mxu1 %v291_v2  ;;  %v350_v40 = vld [vmem:[#allocation6 + $0x5d8] sm:$0xff]  ;;  %v213_v41 = vld [vmem:[#allocation6 + $0x190] sm:$0xff] }
  0x31   :  { %486 = vmatpush.msra.mxu2 %v164_v3  ;;  %506 = vmatpush.msra.mxu3 %v292_v4  ;;  %v341_v42 = vld [vmem:[#allocation6 + $0x590] sm:$0xff]  ;;  %v214_v43 = vld [vmem:[#allocation6 + $0x198] sm:$0xff] }
  0x32   :  { %511 = vmatpush.msrb.mxu0 %v285_v5  ;;  %531 = vmatpush.msrb.mxu1 %v413_v6  ;;  %v342_v44 = vld [vmem:[#allocation6 + $0x598] sm:$0xff]  ;;  %v205_v45 = vld [vmem:[#allocation6 + $0x150] sm:$0xff] }
  0x33   :  { %551 = vmatpush.msrb.mxu2 %v286_v7  ;;  %571 = vmatpush.msrb.mxu3 %v414_v8  ;;  %v333_v46 = vld [vmem:[#allocation6 + $0x550] sm:$0xff]  ;;  %v206_v47 = vld [vmem:[#allocation6 + $0x158] sm:$0xff] }
  0x34   :  { %512 = vmatpush.msrb.mxu0 %v277_v9  ;;  %532 = vmatpush.msrb.mxu1 %v405_v10  ;;  %v936_v48 = vld [vmem:[#allocation3] sm:$0xff]  ;;  %v938_v49 = vld [vmem:[#allocation3 + $0x8] sm:$0xff] }
  0x35   :  { %552 = vmatpush.msrb.mxu2 %v278_v11  ;;  %572 = vmatpush.msrb.mxu3 %v406_v12  ;;  %v334_v50 = vld [vmem:[#allocation6 + $0x558] sm:$0xff]  ;;  %v197_v51 = vld [vmem:[#allocation6 + $0x110] sm:$0xff]  ;;  %v59_v58 = vperm.slane %v936_v48, 0  ;;  %v60_v59 = vperm.slane %v936_v48, 4  ;;  %v117_v60 = vperm.slane %v938_v49, 0  ;;  %v118_v1 = vperm.slane %v938_v49, 4 }
  0x36   :  { %513 = vmatpush.msrb.mxu0 %v269_v13  ;;  %533 = vmatpush.msrb.mxu1 %v397_v14  ;;  %v325_v52 = vld [vmem:[#allocation6 + $0x510] sm:$0xff]  ;;  %v198_v53 = vld [vmem:[#allocation6 + $0x118] sm:$0xff]  ;;  %v85_v0 = vperm.slane %v936_v48, 2  ;;  %v86_v2 = vperm.slane %v936_v48, 6  ;;  %v71_v5 = vperm.slane %v936_v48, 1  ;;  %v72_v6 = vperm.slane %v936_v48, 5 }
  0x37   :  { %553 = vmatpush.msrb.mxu2 %v270_v15  ;;  %573 = vmatpush.msrb.mxu3 %v398_v16  ;;  %v326_v54 = vld [vmem:[#allocation6 + $0x518] sm:$0xff]  ;;  %v189_v55 = vld [vmem:[#allocation6 + $0xd0] sm:$0xff]  ;;  %v125_v7 = vperm.slane %v938_v49, 1  ;;  %v126_v8 = vperm.slane %v938_v49, 5  ;;  %v135_v11 = vperm.slane %v938_v49, 2  ;;  %v136_v12 = vperm.slane %v938_v49, 6 }
  0x38   :  { %514 = vmatpush.msrb.mxu0 %v261_v17  ;;  %534 = vmatpush.msrb.mxu1 %v389_v18  ;;  %v317_v56 = vld [vmem:[#allocation6 + $0x4d0] sm:$0xff]  ;;  %v190_v62 = vld [vmem:[#allocation6 + $0xd8] sm:$0xff]  ;;  %v100_v13 = vperm.slane %v936_v48, 7  ;;  %v146_v14 = vperm.slane %v938_v49, 7  ;;  %v63_v17 = vperm.slane %v59_v58, 0  ;;  %v64_v18 = vperm.slane %v60_v59, 0 }
  0x39   :  { %554 = vmatpush.msrb.mxu2 %v262_v19  ;;  %574 = vmatpush.msrb.mxu3 %v390_v20  ;;  %v318_v63 = vld [vmem:[#allocation6 + $0x4d8] sm:$0xff]  ;;  %v181_v3 = vld [vmem:[#allocation6 + $0x90] sm:$0xff]  ;;  %v121_v19 = vperm.slane %v117_v60, 0  ;;  %v99_v20 = vperm.slane %v936_v48, 3 }
  0x3a   :  { %515 = vmatpush.msrb.mxu0 %v253_v21  ;;  %535 = vmatpush.msrb.mxu1 %v381_v22  ;;  %v309_v4 = vld [vmem:[#allocation6 + $0x490] sm:$0xff]  ;;  %v182_v9 = vld [vmem:[#allocation6 + $0x98] sm:$0xff] }
  0x3b   :  { %555 = vmatpush.msrb.mxu2 %v254_v23  ;;  %575 = vmatpush.msrb.mxu3 %v382_v24  ;;  %v310_v10 = vld [vmem:[#allocation6 + $0x498] sm:$0xff]  ;;  %v173_v15 = vld [vmem:[#allocation6 + $0x50] sm:$0xff]  ;;  %v122_v23 = vperm.slane %v118_v1, 0  ;;  %v89_v24 = vperm.slane %v85_v0, 2 }
  0x3c   :  { %516 = vmatpush.msrb.mxu0 %v245_v25  ;;  %536 = vmatpush.msrb.mxu1 %v373_v26  ;;  %v301_v16 = vld [vmem:[#allocation6 + $0x450] sm:$0xff]  ;;  %v174_v21 = vld [vmem:[#allocation6 + $0x58] sm:$0xff]  ;;  %v90_v25 = vperm.slane %v86_v2, 2  ;;  %v145_v26 = vperm.slane %v938_v49, 3 }
  0x3d   :  { %556 = vmatpush.msrb.mxu2 %v246_v27  ;;  %576 = vmatpush.msrb.mxu3 %v374_v28  ;;  %v302_v22 = vld [vmem:[#allocation6 + $0x458] sm:$0xff]  ;;  %v165_v27 = vld [vmem:[#allocation6 + $0x10] sm:$0xff] }
  0x3e   :  { %517 = vmatpush.msrb.mxu0 %v237_v29  ;;  %537 = vmatpush.msrb.mxu1 %v365_v30  ;;  %v293_v28 = vld [vmem:[#allocation6 + $0x410] sm:$0xff]  ;;  %v75_v29 = vperm.slane %v71_v5, 1  ;;  %v76_v30 = vperm.slane %v72_v6, 1  ;;  %v149_v48 = vperm.slane %v145_v26, 3  ;;  %v400_v26 = vld [vmem:[#allocation6 + $0x768] sm:$0xff] }
  0x3f   :  { %557 = vmatpush.msrb.mxu2 %v238_v31  ;;  %577 = vmatpush.msrb.mxu3 %v366_v32  ;;  %v129_v31 = vperm.slane %v125_v7, 1  ;;  %v130_v32 = vperm.slane %v126_v8, 1 }
  0x40   :  { %518 = vmatpush.msrb.mxu0 %v229_v33  ;;  %538 = vmatpush.msrb.mxu1 %v357_v34  ;;  %v166_v33 = vld [vmem:[#allocation6 + $0x18] sm:$0xff] }
  0x41   :  { %558 = vmatpush.msrb.mxu2 %v230_v35  ;;  %578 = vmatpush.msrb.mxu3 %v358_v36  ;;  %v294_v34 = vld [vmem:[#allocation6 + $0x418] sm:$0xff]  ;;  %v139_v35 = vperm.slane %v135_v11, 2  ;;  %v140_v36 = vperm.slane %v136_v12, 2 }
  0x42   :  { %519 = vmatpush.msrb.mxu0 %v221_v37  ;;  %539 = vmatpush.msrb.mxu1 %v349_v38  ;;  %v104_v37 = vperm.slane %v100_v13, 3  ;;  %v150_v38 = vperm.slane %v146_v14, 3  ;;  %v287_v13 = vld [vmem:[#allocation6 + $0x3e0] sm:$0xff] }
  0x43   :  { %559 = vmatpush.msrb.mxu2 %v222_v39  ;;  %579 = vmatpush.msrb.mxu3 %v350_v40  ;;  %v415_v14 = vld [vmem:[#allocation6 + $0x7e0] sm:$0xff] }
  0x44   :  { %520 = vmatpush.msrb.mxu0 %v213_v41  ;;  %540 = vmatpush.msrb.mxu1 %v341_v42  ;;  %v103_v42 = vperm.slane %v99_v20, 3  ;;  %v407_v20 = vld [vmem:[#allocation6 + $0x7a0] sm:$0xff] }
  0x45   :  { %560 = vmatpush.msrb.mxu2 %v214_v43  ;;  %580 = vmatpush.msrb.mxu3 %v342_v44 }
  0x46   :  { %521 = vmatpush.msrb.mxu0 %v205_v45  ;;  %541 = vmatpush.msrb.mxu1 %v333_v46 }
  0x47   :  { %561 = vmatpush.msrb.mxu2 %v206_v47  ;;  %581 = vmatpush.msrb.mxu3 %v334_v50 }
  0x48   :  { %522 = vmatpush.msrb.mxu0 %v197_v51  ;;  %542 = vmatpush.msrb.mxu1 %v325_v52 }
  0x49   :  { %562 = vmatpush.msrb.mxu2 %v198_v53  ;;  %582 = vmatpush.msrb.mxu3 %v326_v54 }
  0x4a   :  { %523 = vmatpush.msrb.mxu0 %v189_v55  ;;  %543 = vmatpush.msrb.mxu1 %v317_v56 }
  0x4b   :  { %563 = vmatpush.msrb.mxu2 %v190_v62  ;;  %583 = vmatpush.msrb.mxu3 %v318_v63 }
  0x4c   :  { %524 = vmatpush.msrb.mxu0 %v181_v3  ;;  %544 = vmatpush.msrb.mxu1 %v309_v4 }
  0x4d   :  { %564 = vmatpush.msrb.mxu2 %v182_v9  ;;  %584 = vmatpush.msrb.mxu3 %v310_v10 }
  0x4e   :  { %525 = vmatpush.msrb.mxu0 %v173_v15  ;;  %545 = vmatpush.msrb.mxu1 %v301_v16 }
  0x4f   :  { %565 = vmatpush.msrb.mxu2 %v174_v21  ;;  %585 = vmatpush.msrb.mxu3 %v302_v22  ;;  %v280_v21 = vld [vmem:[#allocation6 + $0x3a8] sm:$0xff] }
  0x50   :  { %526 = vmatpush.msrb.mxu0 %v165_v27  ;;  %546 = vmatpush.msrb.mxu1 %v293_v28  ;;  %v408_v22 = vld [vmem:[#allocation6 + $0x7a8] sm:$0xff]  ;;  %v263_v27 = vld [vmem:[#allocation6 + $0x320] sm:$0xff] }
  0x51   :  { %566 = vmatpush.msrb.mxu2 %v166_v33  ;;  %586 = vmatpush.msrb.mxu3 %v294_v34  ;;  %v391_v28 = vld [vmem:[#allocation6 + $0x720] sm:$0xff]  ;;  %v256_v33 = vld [vmem:[#allocation6 + $0x2e8] sm:$0xff] }
  0x52   :  { %v384_v34 = vld [vmem:[#allocation6 + $0x6e8] sm:$0xff] }
  0x80   :  { %v940_v57 = vpop.permute.xlu0 %55 }
  0x81   :  { %v945_v61 = vpop.permute.xlu1 %82  ;;  %v65_v39 = vmul.f32 %v63_v17, %v940_v57  ;;  %v66_v40 = vmul.f32 %v64_v18, %v940_v57  ;;  %v123_v41 = vmul.f32 %v121_v19, %v940_v57  ;;  %v124_v43 = vmul.f32 %v122_v23, %v940_v57  ;;  %v288_v17 = vld [vmem:[#allocation6 + $0x3e8] sm:$0xff]  ;;  %v279_v19 = vld [vmem:[#allocation6 + $0x3a0] sm:$0xff] }
  0x82   :  { %v91_v44 = vmul.f32 %v89_v24, %v945_v61  ;;  %v92_v45 = vmul.f32 %v90_v25, %v945_v61  ;;  %v141_v53 = vmul.f32 %v139_v35, %v945_v61  ;;  %v142_v54 = vmul.f32 %v140_v36, %v945_v61  ;;  %v416_v18 = vld [vmem:[#allocation6 + $0x7e8] sm:$0xff]  ;;  %v271_v23 = vld [vmem:[#allocation6 + $0x360] sm:$0xff] }
  0x83   :  { %v399_v24 = vld [vmem:[#allocation6 + $0x760] sm:$0xff]  ;;  %v272_v25 = vld [vmem:[#allocation6 + $0x368] sm:$0xff] }
  0x84   :  { %v247_v35 = vld [vmem:[#allocation6 + $0x2a0] sm:$0xff] }
  0x85   :  { %v375_v36 = vld [vmem:[#allocation6 + $0x6a0] sm:$0xff] }
  0x89   :  { %v69_v46 = vpop.permute.xlu0 %68 }
  0x8a   :  { %v97_v47 = vpop.permute.xlu1 %96  ;;  %v77_v49 = vmul.f32 %v75_v29, %v69_v46  ;;  %v78_v50 = vmul.f32 %v76_v30, %v69_v46  ;;  %v131_v51 = vmul.f32 %v129_v31, %v69_v46  ;;  %v132_v52 = vmul.f32 %v130_v32, %v69_v46  ;;  %v264_v29 = vld [vmem:[#allocation6 + $0x328] sm:$0xff]  ;;  %v255_v31 = vld [vmem:[#allocation6 + $0x2e0] sm:$0xff] }
  0x8b   :  { %v106_v55 = vmul.f32 %v104_v37, %v97_v47  ;;  %v152_v56 = vmul.f32 %v150_v38, %v97_v47  ;;  %v105_v62 = vmul.f32 %v103_v42, %v97_v47  ;;  %v151_v63 = vmul.f32 %v149_v48, %v97_v47  ;;  %v392_v30 = vld [vmem:[#allocation6 + $0x728] sm:$0xff]  ;;  %v383_v32 = vld [vmem:[#allocation6 + $0x6e0] sm:$0xff] }
  0x8c   :  { %v79_v57 = vadd.f32 %v77_v49, %v65_v39  ;;  %v80_v58 = vadd.f32 %v78_v50, %v66_v40  ;;  %v133_v59 = vadd.f32 %v131_v51, %v123_v41  ;;  %v134_v60 = vadd.f32 %v132_v52, %v124_v43  ;;  %v248_v37 = vld [vmem:[#allocation6 + $0x2a8] sm:$0xff]  ;;  %v239_v39 = vld [vmem:[#allocation6 + $0x260] sm:$0xff] }
  0x8d   :  { %v376_v38 = vld [vmem:[#allocation6 + $0x6a8] sm:$0xff]  ;;  %v367_v40 = vld [vmem:[#allocation6 + $0x660] sm:$0xff] }
  0x8e   :  { %v93_v1 = vadd.f32 %v91_v44, %v79_v57  ;;  %v94_v0 = vadd.f32 %v92_v45, %v80_v58  ;;  %v143_v2 = vadd.f32 %v141_v53, %v133_v59  ;;  %v144_v3 = vadd.f32 %v142_v54, %v134_v60  ;;  %v240_v41 = vld [vmem:[#allocation6 + $0x268] sm:$0xff]  ;;  %v231_v43 = vld [vmem:[#allocation6 + $0x220] sm:$0xff] }
  0x8f   :  { %v368_v42 = vld [vmem:[#allocation6 + $0x668] sm:$0xff]  ;;  %v359_v44 = vld [vmem:[#allocation6 + $0x620] sm:$0xff] }
  0x90   :  { %v108_v4 = vadd.f32 %v106_v55, %v94_v0  ;;  %v154_v5 = vadd.f32 %v152_v56, %v144_v3  ;;  %v107_v6 = vadd.f32 %v105_v62, %v93_v1  ;;  %v153_v8 = vadd.f32 %v151_v63, %v143_v2  ;;  %v232_v45 = vld [vmem:[#allocation6 + $0x228] sm:$0xff]  ;;  %v223_v47 = vld [vmem:[#allocation6 + $0x1e0] sm:$0xff] }
  0x91   :  { %v360_v46 = vld [vmem:[#allocation6 + $0x628] sm:$0xff]  ;;  %v351_v48 = vld [vmem:[#allocation6 + $0x5e0] sm:$0xff] }
  0x92   :  { %v111_v7 = vrot.slane %v108_v4, 4  ;;  %v157_v9 = vrot.slane %v154_v5, 4  ;;  %v224_v49 = vld [vmem:[#allocation6 + $0x1e8] sm:$0xff]  ;;  %v215_v51 = vld [vmem:[#allocation6 + $0x1a0] sm:$0xff] }
  0x93   :  { %v352_v50 = vld [vmem:[#allocation6 + $0x5e8] sm:$0xff]  ;;  %v343_v52 = vld [vmem:[#allocation6 + $0x5a0] sm:$0xff] }
  0x94   :  { %v113_v61 = vsel %vm112_vm0, %v107_v6, %v111_v7  ;;  %v158_v10 = vsel %vm112_vm0, %v153_v8, %v157_v9  ;;  %v216_v53 = vld [vmem:[#allocation6 + $0x1a8] sm:$0xff]  ;;  %v207_v55 = vld [vmem:[#allocation6 + $0x160] sm:$0xff] }
  0x95   :  { %115 = vst [vmem:[#allocation2] sm:$0x33] %v113_v61  ;;  %v159_v11 = vrot.slane %v158_v10, 6  ;;  %v344_v54 = vld [vmem:[#allocation6 + $0x5a8] sm:$0xff]  ;;  %v335_v56 = vld [vmem:[#allocation6 + $0x560] sm:$0xff] }
  0x96   :  { %v208_v57 = vld [vmem:[#allocation6 + $0x168] sm:$0xff]  ;;  %v199_v59 = vld [vmem:[#allocation6 + $0x120] sm:$0xff] }
  0x97   :  { %161 = vst [vmem:[#allocation2] sm:$0xcc] %v159_v11  ;;  %v336_v58 = vld [vmem:[#allocation6 + $0x568] sm:$0xff]  ;;  %v327_v60 = vld [vmem:[#allocation6 + $0x520] sm:$0xff] }
  0x98   :  { %v200_v62 = vld [vmem:[#allocation6 + $0x128] sm:$0xff]  ;;  %v191_v1 = vld [vmem:[#allocation6 + $0xe0] sm:$0xff] }
  0x99   :  { %v328_v63 = vld [vmem:[#allocation6 + $0x528] sm:$0xff]  ;;  %v319_v0 = vld [vmem:[#allocation6 + $0x4e0] sm:$0xff] }
  0x9a   :  { %v192_v2 = vld [vmem:[#allocation6 + $0xe8] sm:$0xff]  ;;  %v183_v4 = vld [vmem:[#allocation6 + $0xa0] sm:$0xff] }
  0x9b   :  { %v320_v3 = vld [vmem:[#allocation6 + $0x4e8] sm:$0xff]  ;;  %v311_v5 = vld [vmem:[#allocation6 + $0x4a0] sm:$0xff] }
  0x9c   :  { %v184_v6 = vld [vmem:[#allocation6 + $0xa8] sm:$0xff]  ;;  %v175_v8 = vld [vmem:[#allocation6 + $0x60] sm:$0xff] }
  0x9d   :  { %v312_v7 = vld [vmem:[#allocation6 + $0x4a8] sm:$0xff]  ;;  %v303_v9 = vld [vmem:[#allocation6 + $0x460] sm:$0xff] }
  0x9e   :  { %v162_v12 = vld [vmem:[#allocation2] sm:$0xff]  ;;  %v167_v11 = vld [vmem:[#allocation6 + $0x20] sm:$0xff] }
  0x9f   :  { %426 = vst [vmem:[#allocation1] ss:$2 sm:$0xff] %v162_v12  ;;  %v176_v61 = vld [vmem:[#allocation6 + $0x68] sm:$0xff]  ;;  %v295_v12 = vld [vmem:[#allocation6 + $0x420] sm:$0xff] }
  0xa0   :  { %v304_v10 = vld [vmem:[#allocation6 + $0x468] sm:$0xff] }
  0xa6   :  { %v970_v15 = vld.sshfl [vmem:[#allocation1] sm:$0xff pattern:$0x75316420]  ;;  %v972_v16 = vld.sshfl [vmem:[#allocation1 + $0x8] sm:$0xff pattern:$0x75316420] }
  0xa7   :  { %447 = vmatmul.f32.vlgmr.msra.gmra.mxu0 %v970_v15  ;;  %467 = vmatmul.f32.vlgmr.msra.gmra.mxu1 %v972_v16 }
  0xa8   :  { %487 = vmatmul.f32.vlgmr.msra.gmra.mxu2 %v970_v15  ;;  %507 = vmatmul.f32.vlgmr.msra.gmra.mxu3 %v972_v16 }
  0xa9   :  { %591 = vmatpush.msra.mxu0 %v287_v13  ;;  %611 = vmatpush.msra.mxu1 %v415_v14  ;;  %v168_v13 = vld [vmem:[#allocation6 + $0x28] sm:$0xff] }
  0xaa   :  { %631 = vmatpush.msra.mxu2 %v288_v17  ;;  %651 = vmatpush.msra.mxu3 %v416_v18  ;;  %v296_v14 = vld [vmem:[#allocation6 + $0x428] sm:$0xff]  ;;  %v289_v17 = vld [vmem:[#allocation6 + $0x3f0] sm:$0xff] }
  0xab   :  { %592 = vmatpush.msra.mxu0 %v279_v19  ;;  %612 = vmatpush.msra.mxu1 %v407_v20  ;;  %v417_v18 = vld [vmem:[#allocation6 + $0x7f0] sm:$0xff]  ;;  %v290_v19 = vld [vmem:[#allocation6 + $0x3f8] sm:$0xff] }
  0xac   :  { %632 = vmatpush.msra.mxu2 %v280_v21  ;;  %652 = vmatpush.msra.mxu3 %v408_v22  ;;  %v418_v20 = vld [vmem:[#allocation6 + $0x7f8] sm:$0xff]  ;;  %v281_v21 = vld [vmem:[#allocation6 + $0x3b0] sm:$0xff] }
  0xad   :  { %593 = vmatpush.msra.mxu0 %v271_v23  ;;  %613 = vmatpush.msra.mxu1 %v399_v24  ;;  %v409_v22 = vld [vmem:[#allocation6 + $0x7b0] sm:$0xff]  ;;  %v282_v23 = vld [vmem:[#allocation6 + $0x3b8] sm:$0xff] }
  0xae   :  { %633 = vmatpush.msra.mxu2 %v272_v25  ;;  %653 = vmatpush.msra.mxu3 %v400_v26  ;;  %v410_v24 = vld [vmem:[#allocation6 + $0x7b8] sm:$0xff]  ;;  %v419_v25 = vld [vmem:[%s1003_s3] sm:$0xf]  ;;  %v273_v26 = vld [vmem:[#allocation6 + $0x370] sm:$0xff]  ;;  %s898_s3 = smov [#allocation8]  }
  0xaf   :  { %594 = vmatpush.msra.mxu0 %v263_v27  ;;  %614 = vmatpush.msra.mxu1 %v391_v28  ;;  %v401_v27 = vld [vmem:[#allocation6 + $0x770] sm:$0xff]  ;;  %v274_v28 = vld [vmem:[#allocation6 + $0x378] sm:$0xff]  ;;  %s780_s30 = sshll.u32 %s898_s3, 4  ;;  %s781_s30 = int_to_ptr.vmem [resolvable:$true] %s780_s30 }
  0xb0   :  { %634 = vmatpush.msra.mxu2 %v264_v29  ;;  %654 = vmatpush.msra.mxu3 %v392_v30  ;;  %v402_v29 = vld [vmem:[#allocation6 + $0x778] sm:$0xff]  ;;  %v265_v30 = vld [vmem:[#allocation6 + $0x330] sm:$0xff] }
  0xb1   :  { %527 = vmatmul.f32.vlgmr.msrb.gmra.mxu0 %v970_v15  ;;  %547 = vmatmul.f32.vlgmr.msrb.gmra.mxu1 %v972_v16 }
  0xb2   :  { %567 = vmatmul.f32.vlgmr.msrb.gmra.mxu2 %v970_v15  ;;  %587 = vmatmul.f32.vlgmr.msrb.gmra.mxu3 %v972_v16 }
  0xb3   :  { %595 = vmatpush.msra.mxu0 %v255_v31  ;;  %615 = vmatpush.msra.mxu1 %v383_v32  ;;  %v393_v31 = vld [vmem:[#allocation6 + $0x730] sm:$0xff]  ;;  %v266_v32 = vld [vmem:[#allocation6 + $0x338] sm:$0xff] }
  0xb4   :  { %635 = vmatpush.msra.mxu2 %v256_v33  ;;  %655 = vmatpush.msra.mxu3 %v384_v34  ;;  %v394_v33 = vld [vmem:[#allocation6 + $0x738] sm:$0xff]  ;;  %v257_v34 = vld [vmem:[#allocation6 + $0x2f0] sm:$0xff] }
  0xb5   :  { %596 = vmatpush.msra.mxu0 %v247_v35  ;;  %616 = vmatpush.msra.mxu1 %v375_v36  ;;  %v385_v35 = vld [vmem:[#allocation6 + $0x6f0] sm:$0xff]  ;;  %v258_v36 = vld [vmem:[#allocation6 + $0x2f8] sm:$0xff] }
  0xb6   :  { %636 = vmatpush.msra.mxu2 %v248_v37  ;;  %656 = vmatpush.msra.mxu3 %v376_v38  ;;  %v386_v37 = vld [vmem:[#allocation6 + $0x6f8] sm:$0xff]  ;;  %v249_v38 = vld [vmem:[#allocation6 + $0x2b0] sm:$0xff] }
  0xb7   :  { %597 = vmatpush.msra.mxu0 %v239_v39  ;;  %617 = vmatpush.msra.mxu1 %v367_v40  ;;  %v377_v39 = vld [vmem:[#allocation6 + $0x6b0] sm:$0xff]  ;;  %v250_v40 = vld [vmem:[#allocation6 + $0x2b8] sm:$0xff] }
  0xb8   :  { %637 = vmatpush.msra.mxu2 %v240_v41  ;;  %657 = vmatpush.msra.mxu3 %v368_v42  ;;  %v378_v41 = vld [vmem:[#allocation6 + $0x6b8] sm:$0xff]  ;;  %v241_v42 = vld [vmem:[#allocation6 + $0x270] sm:$0xff] }
  0xb9   :  { %598 = vmatpush.msra.mxu0 %v231_v43  ;;  %618 = vmatpush.msra.mxu1 %v359_v44  ;;  %v369_v43 = vld [vmem:[#allocation6 + $0x670] sm:$0xff]  ;;  %v242_v44 = vld [vmem:[#allocation6 + $0x278] sm:$0xff] }
  0xba   :  { %638 = vmatpush.msra.mxu2 %v232_v45  ;;  %658 = vmatpush.msra.mxu3 %v360_v46  ;;  %v370_v45 = vld [vmem:[#allocation6 + $0x678] sm:$0xff]  ;;  %v233_v46 = vld [vmem:[#allocation6 + $0x230] sm:$0xff] }
  0xbb   :  { %599 = vmatpush.msra.mxu0 %v223_v47  ;;  %619 = vmatpush.msra.mxu1 %v351_v48  ;;  %v361_v47 = vld [vmem:[#allocation6 + $0x630] sm:$0xff]  ;;  %v234_v48 = vld [vmem:[#allocation6 + $0x238] sm:$0xff] }
  0xbc   :  { %639 = vmatpush.msra.mxu2 %v224_v49  ;;  %659 = vmatpush.msra.mxu3 %v352_v50  ;;  %v362_v49 = vld [vmem:[#allocation6 + $0x638] sm:$0xff]  ;;  %v225_v50 = vld [vmem:[#allocation6 + $0x1f0] sm:$0xff] }
  0xbd   :  { %600 = vmatpush.msra.mxu0 %v215_v51  ;;  %620 = vmatpush.msra.mxu1 %v343_v52  ;;  %v353_v51 = vld [vmem:[#allocation6 + $0x5f0] sm:$0xff]  ;;  %v226_v52 = vld [vmem:[#allocation6 + $0x1f8] sm:$0xff] }
  0xbe   :  { %640 = vmatpush.msra.mxu2 %v216_v53  ;;  %660 = vmatpush.msra.mxu3 %v344_v54  ;;  %v354_v53 = vld [vmem:[#allocation6 + $0x5f8] sm:$0xff]  ;;  %v217_v54 = vld [vmem:[#allocation6 + $0x1b0] sm:$0xff] }
  0xbf   :  { %601 = vmatpush.msra.mxu0 %v207_v55  ;;  %621 = vmatpush.msra.mxu1 %v335_v56  ;;  %v345_v55 = vld [vmem:[#allocation6 + $0x5b0] sm:$0xff]  ;;  %v218_v56 = vld [vmem:[#allocation6 + $0x1b8] sm:$0xff] }
  0xc0   :  { %641 = vmatpush.msra.mxu2 %v208_v57  ;;  %661 = vmatpush.msra.mxu3 %v336_v58  ;;  %v346_v57 = vld [vmem:[#allocation6 + $0x5b8] sm:$0xff]  ;;  %v209_v58 = vld [vmem:[#allocation6 + $0x170] sm:$0xff] }
  0xc1   :  { %602 = vmatpush.msra.mxu0 %v199_v59  ;;  %622 = vmatpush.msra.mxu1 %v327_v60  ;;  %v337_v59 = vld [vmem:[#allocation6 + $0x570] sm:$0xff]  ;;  %v210_v60 = vld [vmem:[#allocation6 + $0x178] sm:$0xff] }
  0xc2   :  { %642 = vmatpush.msra.mxu2 %v200_v62  ;;  %662 = vmatpush.msra.mxu3 %v328_v63  ;;  %v338_v62 = vld [vmem:[#allocation6 + $0x578] sm:$0xff]  ;;  %v201_v63 = vld [vmem:[#allocation6 + $0x130] sm:$0xff] }
  0xc3   :  { %603 = vmatpush.msra.mxu0 %v191_v1  ;;  %623 = vmatpush.msra.mxu1 %v319_v0  ;;  %v329_v1 = vld [vmem:[#allocation6 + $0x530] sm:$0xff]  ;;  %v202_v0 = vld [vmem:[#allocation6 + $0x138] sm:$0xff] }
  0xc4   :  { %643 = vmatpush.msra.mxu2 %v192_v2  ;;  %663 = vmatpush.msra.mxu3 %v320_v3  ;;  %v330_v2 = vld [vmem:[#allocation6 + $0x538] sm:$0xff]  ;;  %v193_v3 = vld [vmem:[#allocation6 + $0xf0] sm:$0xff] }
  0xc5   :  { %604 = vmatpush.msra.mxu0 %v183_v4  ;;  %624 = vmatpush.msra.mxu1 %v311_v5  ;;  %v321_v4 = vld [vmem:[#allocation6 + $0x4f0] sm:$0xff]  ;;  %v194_v5 = vld [vmem:[#allocation6 + $0xf8] sm:$0xff] }
  0xc6   :  { %644 = vmatpush.msra.mxu2 %v184_v6  ;;  %664 = vmatpush.msra.mxu3 %v312_v7  ;;  %v322_v6 = vld [vmem:[#allocation6 + $0x4f8] sm:$0xff]  ;;  %v185_v7 = vld [vmem:[#allocation6 + $0xb0] sm:$0xff] }
  0xc7   :  { %605 = vmatpush.msra.mxu0 %v175_v8  ;;  %625 = vmatpush.msra.mxu1 %v303_v9  ;;  %v313_v8 = vld [vmem:[#allocation6 + $0x4b0] sm:$0xff]  ;;  %v186_v9 = vld [vmem:[#allocation6 + $0xb8] sm:$0xff] }
  0xc8   :  { %645 = vmatpush.msra.mxu2 %v176_v61  ;;  %665 = vmatpush.msra.mxu3 %v304_v10  ;;  %v314_v61 = vld [vmem:[#allocation6 + $0x4b8] sm:$0xff]  ;;  %v177_v10 = vld [vmem:[#allocation6 + $0x70] sm:$0xff] }
  0xc9   :  { %606 = vmatpush.msra.mxu0 %v167_v11  ;;  %626 = vmatpush.msra.mxu1 %v295_v12  ;;  %v305_v11 = vld [vmem:[#allocation6 + $0x470] sm:$0xff]  ;;  %v178_v12 = vld [vmem:[#allocation6 + $0x78] sm:$0xff] }
  0xca   :  { %646 = vmatpush.msra.mxu2 %v168_v13  ;;  %666 = vmatpush.msra.mxu3 %v296_v14  ;;  %v306_v13 = vld [vmem:[#allocation6 + $0x478] sm:$0xff]  ;;  %v169_v14 = vld [vmem:[#allocation6 + $0x30] sm:$0xff] }
  0xcb   :  { %607 = vmatmul.f32.vlgmr.msra.gmra.mxu0 %v970_v15  ;;  %627 = vmatmul.f32.vlgmr.msra.gmra.mxu1 %v972_v16 }
  0xcc   :  { %647 = vmatmul.f32.vlgmr.msra.gmra.mxu2 %v970_v15  ;;  %667 = vmatmul.f32.vlgmr.msra.gmra.mxu3 %v972_v16 }
  0xcd   :  { %671 = vmatpush.msrb.mxu0 %v289_v17  ;;  %691 = vmatpush.msrb.mxu1 %v417_v18  ;;  %v297_v17 = vld [vmem:[#allocation6 + $0x430] sm:$0xff]  ;;  %v170_v18 = vld [vmem:[#allocation6 + $0x38] sm:$0xff] }
  0xce   :  { %711 = vmatpush.msrb.mxu2 %v290_v19  ;;  %731 = vmatpush.msrb.mxu3 %v418_v20  ;;  %v298_v19 = vld [vmem:[#allocation6 + $0x438] sm:$0xff] }
  0xcf   :  { %672 = vmatpush.msrb.mxu0 %v281_v21  ;;  %692 = vmatpush.msrb.mxu1 %v409_v22 }
  0xd0   :  { %712 = vmatpush.msrb.mxu2 %v282_v23  ;;  %732 = vmatpush.msrb.mxu3 %v410_v24 }
  0xd1   :  { %422 = vperm.xlu2 %808, %v419_v25   ;;  %673 = vmatpush.msrb.mxu0 %v273_v26 }
  0xd2   :  { %693 = vmatpush.msrb.mxu1 %v401_v27  ;;  %713 = vmatpush.msrb.mxu2 %v274_v28 }
  0xd3   :  { %733 = vmatpush.msrb.mxu3 %v402_v29  ;;  %674 = vmatpush.msrb.mxu0 %v265_v30 }
  0xd4   :  { %694 = vmatpush.msrb.mxu1 %v393_v31  ;;  %714 = vmatpush.msrb.mxu2 %v266_v32 }
  0xd5   :  { %734 = vmatpush.msrb.mxu3 %v394_v33  ;;  %675 = vmatpush.msrb.mxu0 %v257_v34 }
  0xd6   :  { %695 = vmatpush.msrb.mxu1 %v385_v35  ;;  %715 = vmatpush.msrb.mxu2 %v258_v36 }
  0xd7   :  { %735 = vmatpush.msrb.mxu3 %v386_v37  ;;  %676 = vmatpush.msrb.mxu0 %v249_v38 }
  0xd8   :  { %696 = vmatpush.msrb.mxu1 %v377_v39  ;;  %716 = vmatpush.msrb.mxu2 %v250_v40 }
  0xd9   :  { %736 = vmatpush.msrb.mxu3 %v378_v41  ;;  %677 = vmatpush.msrb.mxu0 %v241_v42 }
  0xda   :  { %697 = vmatpush.msrb.mxu1 %v369_v43  ;;  %717 = vmatpush.msrb.mxu2 %v242_v44 }
  0xdb   :  { %737 = vmatpush.msrb.mxu3 %v370_v45  ;;  %678 = vmatpush.msrb.mxu0 %v233_v46 }
  0xdc   :  { %698 = vmatpush.msrb.mxu1 %v361_v47  ;;  %718 = vmatpush.msrb.mxu2 %v234_v48 }
  0xdd   :  { %738 = vmatpush.msrb.mxu3 %v362_v49  ;;  %679 = vmatpush.msrb.mxu0 %v225_v50 }
  0xde   :  { %699 = vmatpush.msrb.mxu1 %v353_v51  ;;  %719 = vmatpush.msrb.mxu2 %v226_v52 }
  0xdf   :  { %739 = vmatpush.msrb.mxu3 %v354_v53  ;;  %680 = vmatpush.msrb.mxu0 %v217_v54 }
  0xe0   :  { %700 = vmatpush.msrb.mxu1 %v345_v55  ;;  %720 = vmatpush.msrb.mxu2 %v218_v56 }
  0xe1   :  { %740 = vmatpush.msrb.mxu3 %v346_v57  ;;  %681 = vmatpush.msrb.mxu0 %v209_v58 }
  0xe2   :  { %701 = vmatpush.msrb.mxu1 %v337_v59  ;;  %721 = vmatpush.msrb.mxu2 %v210_v60 }
  0xe3   :  { %741 = vmatpush.msrb.mxu3 %v338_v62  ;;  %682 = vmatpush.msrb.mxu0 %v201_v63 }
  0xe4   :  { %702 = vmatpush.msrb.mxu1 %v329_v1  ;;  %722 = vmatpush.msrb.mxu2 %v202_v0 }
  0xe5   :  { %742 = vmatpush.msrb.mxu3 %v330_v2  ;;  %683 = vmatpush.msrb.mxu0 %v193_v3 }
  0xe6   :  { %703 = vmatpush.msrb.mxu1 %v321_v4  ;;  %723 = vmatpush.msrb.mxu2 %v194_v5 }
  0xe7   :  { %743 = vmatpush.msrb.mxu3 %v322_v6  ;;  %684 = vmatpush.msrb.mxu0 %v185_v7 }
  0xe8   :  { %704 = vmatpush.msrb.mxu1 %v313_v8  ;;  %724 = vmatpush.msrb.mxu2 %v186_v9 }
  0xe9   :  { %744 = vmatpush.msrb.mxu3 %v314_v61  ;;  %685 = vmatpush.msrb.mxu0 %v177_v10 }
  0xea   :  { %705 = vmatpush.msrb.mxu1 %v305_v11  ;;  %725 = vmatpush.msrb.mxu2 %v178_v12 }
  0xeb   :  { %745 = vmatpush.msrb.mxu3 %v306_v13  ;;  %686 = vmatpush.msrb.mxu0 %v169_v14 }
  0xec   :  { %706 = vmatpush.msrb.mxu1 %v297_v17  ;;  %726 = vmatpush.msrb.mxu2 %v170_v18 }
  0xed   :  { %746 = vmatpush.msrb.mxu3 %v298_v19  ;;  %687 = vmatmul.f32.vlgmr.msrb.gmra.mxu0 %v970_v15 }
  0xee   :  { %707 = vmatmul.f32.vlgmr.msrb.gmra.mxu1 %v972_v16  ;;  %727 = vmatmul.f32.vlgmr.msrb.gmra.mxu2 %v970_v15 }
  0xef   :  { %747 = vmatmul.f32.vlgmr.msrb.gmra.mxu3 %v972_v16 }
 0x124   :  { %v448_v20 = vpop.f32.mrf.mxu0  ;;  %v468_v27 = vpop.f32.mrf.mxu1 }
 0x12b   :  { %v423_v21 = vpop.permute.xlu2 %422  ;;  %v488_v22 = vpop.f32.mrf.mxu2 }
 0x12c   :  { %v449_v23 = vadd.f32 %v448_v20, %v423_v21  ;;  %v489_v24 = vadd.f32 %v488_v22, %v423_v21  ;;  %v508_v25 = vpop.f32.mrf.mxu3 }
 0x12e   :  { %v509_v26 = vadd.f32 %v508_v25, %v489_v24  ;;  %v469_v28 = vadd.f32 %v468_v27, %v449_v23  ;;  %v528_v31 = vpop.f32.mrf.mxu0  ;;  %v548_v16 = vpop.f32.mrf.mxu1 }
 0x12f   :  { %v529_v33 = vadd.f32 %v528_v31, %v423_v21 }
 0x130   :  { %v759_v29 = vrot.slane %v509_v26, 4 }
 0x131   :  { %v549_v36 = vadd.f32 %v548_v16, %v529_v33 }
 0x132   :  { %v763_v30 = vsel %vm112_vm0, %v469_v28, %v759_v29 }
 0x133   :  { %771 = vst [vmem:[#allocation8] sm:$0xff] %v763_v30 }
 0x135   :  { %v568_v32 = vpop.f32.mrf.mxu2  ;;  %v588_v15 = vpop.f32.mrf.mxu3 }
 0x136   :  { %v569_v34 = vadd.f32 %v568_v32, %v423_v21 }
 0x138   :  { %v589_v35 = vadd.f32 %v588_v15, %v569_v34 }
 0x13a   :  { %v760_v37 = vrot.slane %v589_v35, 4 }
 0x13c   :  { %v764_v38 = vsel %vm112_vm0, %v549_v36, %v760_v37 }
 0x13d   :  { %772 = vst [vmem:[#allocation8 + $0x8] sm:$0xff] %v764_v38 }
 0x148   :  { %v608_v39 = vpop.f32.mrf.mxu0  ;;  %v628_v45 = vpop.f32.mrf.mxu1 }
 0x149   :  { %v609_v41 = vadd.f32 %v608_v39, %v423_v21 }
 0x14b   :  { %v629_v46 = vadd.f32 %v628_v45, %v609_v41 }
 0x14f   :  { %v648_v40 = vpop.f32.mrf.mxu2  ;;  %v668_v43 = vpop.f32.mrf.mxu3 }
 0x150   :  { %v649_v42 = vadd.f32 %v648_v40, %v423_v21 }
 0x152   :  { %v669_v44 = vadd.f32 %v668_v43, %v649_v42 }
 0x154   :  { %v761_v47 = vrot.slane %v669_v44, 4 }
 0x156   :  { %v765_v48 = vsel %vm112_vm0, %v629_v46, %v761_v47 }
 0x157   :  { %773 = vst [vmem:[#allocation8 + $0x10] sm:$0xff] %v765_v48 }
 0x16a   :  { %v688_v49 = vpop.f32.mrf.mxu0 }
 0x16b   :  { %v689_v51 = vadd.f32 %v688_v49, %v423_v21  ;;  %v708_v55 = vpop.f32.mrf.mxu1 }
 0x16d   :  { %v709_v56 = vadd.f32 %v708_v55, %v689_v51 }
 0x171   :  { %v728_v50 = vpop.f32.mrf.mxu2 }
 0x172   :  { %v729_v52 = vadd.f32 %v728_v50, %v423_v21  ;;  %v748_v53 = vpop.f32.mrf.mxu3 }
 0x174   :  { %v749_v54 = vadd.f32 %v748_v53, %v729_v52 }
 0x176   :  { %v762_v57 = vrot.slane %v749_v54, 4 }
 0x178   :  { %v766_v58 = vsel %vm112_vm0, %v709_v56, %v762_v57 }
 0x179   :  { %774 = vst [vmem:[#allocation8 + $0x18] sm:$0xff] %v766_v58 }
 0x17a   :  { %785 = dma.vmem_to_hbm [thread:$0]  %s781_s30, 512, %s783_s7, [#allocation5]  }
 0x17b   :  { %886 = dma.done.wait [#allocation5], 512  }
 0x17c   :  { %887 = vsyncadd [#allocation5], 4294966784 }
 0x17d   :  { %790 = vsyncpa [#allocation4], 1 }
 0x17e   :  { %791 = vsyncpa [#allocation7], 1 }
 0x17f   :  { %792 = vsyncpa [#allocation5], 1 }

</bundles_post_ra>
